<compile_context>
chip_gen: v7x
topology: tpu7x:2x2x1
jax: 0.10.0
libtpu: 0.0.40
codegen_flags: <defaults>
</compile_context>

<pallas_src>
import functools

import jax
import jax.numpy as jnp
import numpy as np
from jax.experimental import pallas as pl
from jax.experimental.pallas import tpu as pltpu

_CHUNK = 512                            # lanes per in-register accumulator chunk (mult of 128)
_ACC_ELEMS = 16 * 1024                  # target accumulator size (elements) -> ~16 vregs f32
_TILE_T_CAP = 16384                     # absolute cap on the T_out tile
_VMEM_BLOCK_BUDGET = 8 * 1024 * 1024    # budget (bytes) for double-buffered in+out blocks


def _round_up(v, m):
    return ((v + m - 1) // m) * m


def _cdiv(a, b):
    return -(-a // b)


def _chunk_edges(tile_t, chunk):
    """Chunk boundaries over [0, tile_t); ragged chunk FIRST so only the final chunk
    (which ends exactly at tile_t) ever needs the halo."""
    if tile_t <= chunk:
        return (0, tile_t)
    rem = tile_t % chunk
    start = rem if rem else chunk
    return (0,) + tuple(range(start, tile_t + 1, chunk))


def _encoder_kernel(x_ref, halo_ref, w_ref, b_ref, o_ref, tail_ref, *,
                    kernel_size, stride, non_negative, edges):
    # x_ref   : (1, stride, tile_t)    polyphase input block (lane dim = output positions)
    # halo_ref: (1, 1, stride, hw)     first (K-1)//stride polyphase columns of the NEXT tile
    # w_ref   : (N, K)                 Conv1d weight (in_channels squeezed), f32
    # b_ref   : (N, 1)                 bias, f32
    # o_ref   : (1, N, tile_t)         output tile in PyTorch NCT layout (lane dim = T_out)
    # tail_ref: (stride, last_sz + hw) scratch: last chunk of x_ref stitched with the halo
    N = o_ref.shape[1]
    tile_t = o_ref.shape[2]
    n_chunks = len(edges) - 1
    last_c0 = edges[-2]
    last_sz = edges[-1] - edges[-2]

    # Stitch the tail window once per grid step (tiny VMEM->VMEM copy) so every chunk below
    # reads its K tap windows with plain static slices.
    tail_ref[:, :last_sz] = x_ref[0, :, last_c0:tile_t]
    tail_ref[:, last_sz:] = halo_ref[0, 0]

    # Hoist the per-tap weight columns and the bias out of the chunk loop.
    bias_col = b_ref[...]                                          # (N, 1)
    w_cols = [w_ref[:, k:k + 1] for k in range(kernel_size)]      # K x (N, 1)

    for ci in range(n_chunks):                 # static unroll over lane chunks
        c0, c1 = edges[ci], edges[ci + 1]
        csz = c1 - c0
        is_last = ci == n_chunks - 1
        # accumulator stays in vregs for this chunk; bias folded into the init
        acc = jnp.broadcast_to(bias_col, (N, csz)).astype(jnp.float32)
        for k in range(kernel_size):           # K unrolled VPU multiply-adds
            r, off = k % stride, k // stride
            if is_last:
                xk = tail_ref[r:r + 1, off:off + csz]                # (1, csz)
            else:
                xk = x_ref[0, r:r + 1, c0 + off:c0 + off + csz]      # (1, csz)
            acc = acc + w_cols[k] * xk                               # (N,1)*(1,csz)->(N,csz)
        if non_negative:
            acc = jnp.maximum(acc, 0.0)                              # ReLU
        o_ref[0, :, c0:c1] = acc.astype(o_ref.dtype)                 # one store per chunk


def _polyphase(x, stride, m_len):
    """xp[b, r, m] = x[b, m*stride + r]  (zero-padded past the end of x)."""
    B, T = x.shape
    L = m_len * stride
    xc = x[:, :L] if L <= T else jnp.pad(x, ((0, 0), (0, L - T)))
    if stride == 1:
        return xc[:, None, :]
    return xc.reshape(B, m_len, stride).transpose(0, 2, 1)            # [B, stride, m_len]


def _build_halo(x, stride, tile_t, grid_t, hw):
    """halo[b, t, r, j] = x[b, ((t+1)*tile_t + j)*stride + r]  (0 past the end of x)."""
    B, T = x.shape
    m = (jnp.arange(grid_t)[:, None] + 1) * tile_t + jnp.arange(hw)[None, :]   # [grid_t, hw]
    s = m[None] * stride + jnp.arange(stride)[:, None, None]                   # [stride, g, hw]
    valid = s < T
    vals = x[:, jnp.minimum(s, T - 1)]                                         # [B, stride, g, hw]
    vals = jnp.where(valid[None], vals, jnp.zeros((), x.dtype))
    return vals.transpose(0, 2, 1, 3)                                          # [B, g, stride, hw]


def encoder_forward(x, weight, bias, *, stride, non_negative=True,
                    out_dtype=None, max_tile_t=_TILE_T_CAP):
    """x: [B, T] (or [B, 1, T]); weight: [N, 1, K] (PyTorch Conv1d layout); bias: [N].

    Returns [B, N, T_out] = ReLU(conv1d(x, weight, stride=stride, VALID) + bias),
    matching Encoder.forward.
    """
    if x.ndim == 3:
        assert x.shape[1] == 1, "Encoder audio input has a single channel"
        x = x[:, 0, :]
    B, T = x.shape
    N, in_c, K = weight.shape
    assert in_c == 1, "Encoder audio input has a single channel"
    assert stride >= 1 and T >= K, "requires T >= kernel_size (VALID conv)"
    out_dtype = x.dtype if out_dtype is None else out_dtype

    t_out = (T - K) // stride + 1
    off_max = (K - 1) // stride                 # halo columns needed from the next tile
    hw = max(off_max, 1)                        # keep a non-empty halo array even when unused

    # Chunk size: keep the (N, chunk) accumulator ~<= 16 vregs, >= 128 lanes, >= halo width.
    chunk = max(128, min(_CHUNK, (_ACC_ELEMS // max(N, 1)) // 128 * 128))
    chunk = max(chunk, _round_up(off_max + 1, 128))

    # --- tile selection: big VMEM-budgeted lane-dense tiles, but keep >= ~8 grid points when
    #     possible so v7x's two TensorCores both get 'parallel' work. ---
    cap = _VMEM_BLOCK_BUDGET // (8 * (stride + N))          # 2 bufs * 4 B * (stride+N) per col
    cap = max(chunk, min(cap, max_tile_t) // chunk * chunk)
    if t_out <= chunk:
        tile_t, grid_t = t_out, 1
    else:
        tiles_for_parallel = max(1, _cdiv(8, B))
        tile_t = max(chunk, min(cap, _round_up(_cdiv(t_out, tiles_for_parallel), chunk)))
        grid_t = _cdiv(t_out, tile_t)
        if grid_t == 1:
            tile_t = t_out                       # single full block (no 128-multiple needed)
    edges = _chunk_edges(tile_t, chunk)
    last_sz = edges[-1] - edges[-2]

    # --- wrapper glue: ONE polyphase transpose pass + a tiny halo gather (no concat copies,
    #     xp padded only up to grid_t*tile_t). ---
    xp = _polyphase(x, stride, grid_t * tile_t)              # [B, stride, grid_t*tile_t]
    halo = _build_halo(x, stride, tile_t, grid_t, hw)        # [B, grid_t, stride, hw] (tiny)
    w2 = weight[:, 0, :].astype(jnp.float32)                 # [N, K]
    b2 = bias.reshape(N, 1).astype(jnp.float32)              # [N, 1]

    kern = functools.partial(_encoder_kernel, kernel_size=K, stride=stride,
                             non_negative=non_negative, edges=edges)

    itemsize = jnp.dtype(x.dtype).itemsize
    cost = pl.CostEstimate(
        flops=2 * B * N * K * t_out,
        transcendentals=0,
        bytes_accessed=int(B * T * itemsize + w2.size * 4 + N * 4
                           + B * N * t_out * jnp.dtype(out_dtype).itemsize),
    )

    out = pl.pallas_call(
        kern,
        out_shape=jax.ShapeDtypeStruct((B, N, t_out), out_dtype),
        grid_spec=pltpu.PrefetchScalarGridSpec(
            num_scalar_prefetch=0,
            grid=(B, grid_t),
            in_specs=[
                pl.BlockSpec((1, stride, tile_t), lambda b, t: (b, 0, t)),
                pl.BlockSpec((1, 1, stride, hw), lambda b, t: (b, t, 0, 0)),
                pl.BlockSpec((N, K), lambda b, t: (0, 0)),   # tiny, VMEM-resident
                pl.BlockSpec((N, 1), lambda b, t: (0, 0)),   # tiny, VMEM-resident
            ],
            out_specs=pl.BlockSpec((1, N, tile_t), lambda b, t: (b, 0, t)),
            scratch_shapes=[pltpu.VMEM((stride, last_sz + hw), x.dtype)],
        ),
        compiler_params=pltpu.CompilerParams(
            dimension_semantics=("parallel", "parallel"),
            vmem_limit_bytes=32 * 1024 * 1024,
        ),
        cost_estimate=cost,
    )(xp, halo, w2, b2)
    return out


def _reference(x, weight, bias, *, stride, non_negative=True):
    # Pure-JAX reference: Conv1d (VALID, stride) + bias + ReLU, NCW layout, full f32.
    y = jax.lax.conv_general_dilated(
        x[:, None, :], weight, window_strides=(stride,), padding="VALID",
        dimension_numbers=("NCH", "OIH", "NCH"),
        precision=jax.lax.Precision.HIGHEST,
    )
    y = y + bias[None, :, None]
    if non_negative:
        y = jnp.maximum(y, 0.0)
    return y


def _check(key, B, T, N, K, stride, **enc_kwargs):
    kx, kwt, kb = jax.random.split(key, 3)
    x = jax.random.normal(kx, (B, T), dtype=jnp.float32)
    weight = 0.5 * jax.random.normal(kwt, (N, 1, K), dtype=jnp.float32)   # PyTorch [N, 1, K]
    bias = 0.1 * jax.random.normal(kb, (N,), dtype=jnp.float32)

    out = encoder_forward(x, weight, bias, stride=stride, non_negative=True, **enc_kwargs)
    out = jax.block_until_ready(out)

    ref = _reference(x, weight, bias, stride=stride, non_negative=True)
    np.testing.assert_allclose(np.asarray(out), np.asarray(ref), rtol=1e-5, atol=1e-5)
    assert out.shape == (B, N, (T - K) // stride + 1)
    return out


if __name__ == "__main__":
    key = jax.random.PRNGKey(0)
    k1, k2, k3 = jax.random.split(key, 3)

    # Encoder(in_channels=1, out_channels=8, kernel_size=4, stride=2): tiny single-tile path.
    _check(k1, B=2, T=64, N=8, K=4, stride=2)

    # Multi-tile path: grid over T_out, halo across tile boundaries, ragged (clipped) final
    # tile.  max_tile_t is shrunk so this stays a small test while exercising grid_t > 1.
    _check(k2, B=2, T=4242, N=16, K=8, stride=2, max_tile_t=1024)

    # kernel_size <= stride (off_max == 0, halo unused) and T not a multiple of stride.
    _check(k3, B=1, T=129, N=8, K=4, stride=4)

    print("KERNEL_OK")
</pallas_src>

<mosaic_0001>
module attributes {stable_mosaic.version = 11 : i64} {
  func.func @_encoder_kernel(%arg0: i32, %arg1: i32, %arg2: memref<1x2x31xf32, #tpu.memory_space<vmem>>, %arg3: memref<1x1x2x1xf32, #tpu.memory_space<vmem>>, %arg4: memref<8x4xf32, #tpu.memory_space<vmem>>, %arg5: memref<8x1xf32, #tpu.memory_space<vmem>>, %arg6: memref<1x8x31xf32, #tpu.memory_space<vmem>>, %arg7: memref<2x32xf32, #tpu.memory_space<vmem>>) attributes {dimension_semantics = [#tpu.dimension_semantics<parallel>, #tpu.dimension_semantics<parallel>], iteration_bounds = array<i64: 2, 1>, scalar_prefetch = 0 : i64, scratch_operands = 1 : i64, tpu.core_type = #tpu.core_type<tc>, window_params = [{transform_indices = @transform_0, window_bounds = array<i64: 1, 2, 31>}, {transform_indices = @transform_1, window_bounds = array<i64: 1, 1, 2, 1>}, {pipeline_mode = #tpu.pipeline_mode<synchronous>, transform_indices = @transform_2, window_bounds = array<i64: 8, 4>}, {pipeline_mode = #tpu.pipeline_mode<synchronous>, transform_indices = @transform_3, window_bounds = array<i64: 8, 1>}, {transform_indices = @transform_4, window_bounds = array<i64: 1, 8, 31>}]} {
    %c0 = arith.constant 0 : index
    %c0_0 = arith.constant 0 : index
    %c0_1 = arith.constant 0 : index
    %0 = vector.load %arg2[%c0, %c0_0, %c0_1] : memref<1x2x31xf32, #tpu.memory_space<vmem>>, vector<1x2x31xf32>
    %1 = vector.shape_cast %0 : vector<1x2x31xf32> to vector<2x31xf32>
    %c0_2 = arith.constant 0 : index
    %c0_3 = arith.constant 0 : index
    %2 = vector.load %arg7[%c0_2, %c0_3] : memref<2x32xf32, #tpu.memory_space<vmem>>, vector<2x31xf32>
    tpu.vector_store %arg7[%c0_2, %c0_3], %1 {strides = array<i32>} : memref<2x32xf32, #tpu.memory_space<vmem>>, vector<2x31xf32>,
    %c0_4 = arith.constant 0 : index
    %c0_5 = arith.constant 0 : index
    %c0_6 = arith.constant 0 : index
    %c0_7 = arith.constant 0 : index
    %3 = vector.load %arg3[%c0_4, %c0_5, %c0_6, %c0_7] : memref<1x1x2x1xf32, #tpu.memory_space<vmem>>, vector<1x1x2x1xf32>
    %4 = vector.shape_cast %3 : vector<1x1x2x1xf32> to vector<2x1xf32>
    %c0_8 = arith.constant 0 : index
    %c31 = arith.constant 31 : index
    %5 = vector.load %arg7[%c0_8, %c31] : memref<2x32xf32, #tpu.memory_space<vmem>>, vector<2x1xf32>
    tpu.vector_store %arg7[%c0_8, %c31], %4 {strides = array<i32>} : memref<2x32xf32, #tpu.memory_space<vmem>>, vector<2x1xf32>,
    %c0_9 = arith.constant 0 : index
    %c0_10 = arith.constant 0 : index
    %6 = vector.load %arg5[%c0_9, %c0_10] : memref<8x1xf32, #tpu.memory_space<vmem>>, vector<8x1xf32>
    %c0_11 = arith.constant 0 : index
    %c0_12 = arith.constant 0 : index
    %7 = vector.load %arg4[%c0_11, %c0_12] : memref<8x4xf32, #tpu.memory_space<vmem>>, vector<8x1xf32>
    %c0_13 = arith.constant 0 : index
    %c1 = arith.constant 1 : index
    %8 = vector.load %arg4[%c0_13, %c1] : memref<8x4xf32, #tpu.memory_space<vmem>>, vector<8x1xf32>
    %c0_14 = arith.constant 0 : index
    %c2 = arith.constant 2 : index
    %9 = vector.load %arg4[%c0_14, %c2] : memref<8x4xf32, #tpu.memory_space<vmem>>, vector<8x1xf32>
    %c0_15 = arith.constant 0 : index
    %c3 = arith.constant 3 : index
    %10 = vector.load %arg4[%c0_15, %c3] : memref<8x4xf32, #tpu.memory_space<vmem>>, vector<8x1xf32>
    %11 = vector.shape_cast %6 : vector<8x1xf32> to vector<8x1xf32>
    %12 = vector.broadcast %11 : vector<8x1xf32> to vector<8x31xf32>
    %c0_16 = arith.constant 0 : index
    %c0_17 = arith.constant 0 : index
    %13 = vector.load %arg7[%c0_16, %c0_17] : memref<2x32xf32, #tpu.memory_space<vmem>>, vector<1x31xf32>
    %14 = vector.broadcast %7 : vector<8x1xf32> to vector<8x31xf32>
    %15 = vector.broadcast %13 : vector<1x31xf32> to vector<8x31xf32>
    %16 = arith.mulf %14, %15 : vector<8x31xf32>
    %17 = arith.addf %12, %16 : vector<8x31xf32>
    %c1_18 = arith.constant 1 : index
    %c0_19 = arith.constant 0 : index
    %18 = vector.load %arg7[%c1_18, %c0_19] : memref<2x32xf32, #tpu.memory_space<vmem>>, vector<1x31xf32>
    %19 = vector.broadcast %8 : vector<8x1xf32> to vector<8x31xf32>
    %20 = vector.broadcast %18 : vector<1x31xf32> to vector<8x31xf32>
    %21 = arith.mulf %19, %20 : vector<8x31xf32>
    %22 = arith.addf %17, %21 : vector<8x31xf32>
    %c0_20 = arith.constant 0 : index
    %c1_21 = arith.constant 1 : index
    %23 = vector.load %arg7[%c0_20, %c1_21] : memref<2x32xf32, #tpu.memory_space<vmem>>, vector<1x31xf32>
    %24 = vector.broadcast %9 : vector<8x1xf32> to vector<8x31xf32>
    %25 = vector.broadcast %23 : vector<1x31xf32> to vector<8x31xf32>
    %26 = arith.mulf %24, %25 : vector<8x31xf32>
    %27 = arith.addf %22, %26 : vector<8x31xf32>
    %c1_22 = arith.constant 1 : index
    %c1_23 = arith.constant 1 : index
    %28 = vector.load %arg7[%c1_22, %c1_23] : memref<2x32xf32, #tpu.memory_space<vmem>>, vector<1x31xf32>
    %29 = vector.broadcast %10 : vector<8x1xf32> to vector<8x31xf32>
    %30 = vector.broadcast %28 : vector<1x31xf32> to vector<8x31xf32>
    %31 = arith.mulf %29, %30 : vector<8x31xf32>
    %32 = arith.addf %27, %31 : vector<8x31xf32>
    %cst = arith.constant 0.000000e+00 : f32
    %33 = vector.broadcast %cst : f32 to vector<8x31xf32>
    %34 = arith.maximumf %32, %33 : vector<8x31xf32>
    %c0_24 = arith.constant 0 : index
    %c0_25 = arith.constant 0 : index
    %c0_26 = arith.constant 0 : index
    %35 = vector.load %arg6[%c0_24, %c0_25, %c0_26] : memref<1x8x31xf32, #tpu.memory_space<vmem>>, vector<1x8x31xf32>
    %36 = vector.shape_cast %35 : vector<1x8x31xf32> to vector<8x31xf32>
    %37 = vector.shape_cast %34 : vector<8x31xf32> to vector<1x8x31xf32>
    tpu.vector_store %arg6[%c0_24, %c0_25, %c0_26], %37 {strides = array<i32>} : memref<1x8x31xf32, #tpu.memory_space<vmem>>, vector<1x8x31xf32>,
    return
  }
  func.func @transform_0(%arg0: i32, %arg1: i32) -> (i32, i32, i32) {
    %c0_i32 = arith.constant 0 : i32
    %c0_i32_0 = arith.constant 0 : i32
    return %arg0, %c0_i32, %arg1 : i32, i32, i32
  }
  func.func @transform_1(%arg0: i32, %arg1: i32) -> (i32, i32, i32, i32) {
    %c0_i32 = arith.constant 0 : i32
    %c0_i32_0 = arith.constant 0 : i32
    %c0_i32_1 = arith.constant 0 : i32
    return %arg0, %arg1, %c0_i32, %c0_i32_0 : i32, i32, i32, i32
  }
  func.func @transform_2(%arg0: i32, %arg1: i32) -> (i32, i32) {
    %c0_i32 = arith.constant 0 : i32
    %c0_i32_0 = arith.constant 0 : i32
    %c0_i32_1 = arith.constant 0 : i32
    return %c0_i32, %c0_i32_0 : i32, i32
  }
  func.func @transform_3(%arg0: i32, %arg1: i32) -> (i32, i32) {
    %c0_i32 = arith.constant 0 : i32
    %c0_i32_0 = arith.constant 0 : i32
    %c0_i32_1 = arith.constant 0 : i32
    return %c0_i32, %c0_i32_0 : i32, i32
  }
  func.func @transform_4(%arg0: i32, %arg1: i32) -> (i32, i32, i32) {
    %c0_i32 = arith.constant 0 : i32
    %c0_i32_0 = arith.constant 0 : i32
    return %arg0, %c0_i32, %arg1 : i32, i32, i32
  }
}

</mosaic_0001>

<bundles_post_ra>
// kernel: tpu_custom_call.1
= control target key start
LH: loop header
LB: loop body
LE: loop exit
PB: predicated region body
PF: predicated region fallthrough
CT: control target
= control target key end

     0   :  { %9 = vsyncpa [#allocation4], 0  ;;  %s723_s0 = inlined_call_operand.vmem [shape: f32[2,2,31], index: 0, kind: input, shape index: {}]   ;;  %s724_s1 = inlined_call_operand.vmem [shape: f32[2,1,2,1], index: 1, kind: input, shape index: {}]   ;;  %s725_s2 = inlined_call_operand.vmem [shape: f32[8,4], index: 2, kind: input, shape index: {}]   ;;  %s726_s3 = inlined_call_operand.vmem [shape: f32[8,1], index: 3, kind: input, shape index: {}]   ;;  %s727_s4 = inlined_call_operand.hbm [shape: f32[2,8,31], index: 4, kind: output, shape index: {}]  }
   0x1   :  { %11 = vsyncpa [#allocation4 + $0x1], 0  ;;  %s602_s15 = smov 0   ;;  %s604_s16 = smov 0  }
   0x2   :  { %s606_s17 = smov 0   ;;  %s608_s18 = smov 0  }
   0x3   :  { %s610_s19 = smov 0   ;;  %s612_s20 = smov 0  }
   0x4 LB: > { %s410_s21 = sadd.s32 4294967295, %s568_s20   ;;  %s411_s22 = sadd.s32 4294967294, %s568_s20   ;;  %s568_s20 = sphi %s612_s20, %s17_s20   ;;  %s564_s19 = sphi %s610_s19, %s734_s19   ;;  %s560_s18 = sphi %s608_s18, %s733_s18   ;;  %s556_s17 = sphi %s606_s17, %s732_s17   ;;  %s552_s16 = sphi %s604_s16, %s731_s16   ;;  %s548_s15 = sphi %s602_s15, %s730_s15  }
   0x5   : > { %s29_s23 = sadd.s32 1, %s564_s19  ;;  %s136_s24 = sadd.s32 1, %s556_s17 }
   0x6   : > { %p31_p0 = scmp.ge.s32.totalorder %s29_s23, 2  ;;  %p146_p1 = scmp.ne.s32.totalorder %s556_s17, %s552_s16 }
   0x7   : > { %p147_p2 = scmp.eq.s32.totalorder %s410_s21, 1  ;;  %p152_p3 = scmp.ne.s32.totalorder %s552_s16, %s548_s15 }
   0x8   : > { %s736_s23 = smov (%p31_p0, %s29_s23), 0  ;;  %p153_p5 = scmp.eq.s32.totalorder %s411_s22, 1 }
   0x9   : > { %p642_p4 = por %p147_p2, %p146_p1  ;;  %s131_s26 = ssub.s32 %s564_s19, %s736_s23 }
   0xa   : > { %p414_p6 = scmp.ge.s32.totalorder %s568_s20, 1  ;;  %p134_p7 = scmp.eq.s32.totalorder %s131_s26, 0 }
   0xb   : > { %p649_p8 = por %p153_p5, %p152_p3  ;;  %p197_p9 = scmp.lt.s32.totalorder %s568_s20, 3 }
   0xc   : > { %s655_s28 = scalar_select %p134_p7, %s556_s17, %s136_s24  }
   0xd   : > { %p198_p10 = pnand %p414_p6, %p197_p9 }
   0xe   : > { %v257_v0 = vld [vmem:[%s725_s2] sm:$0xff] (!%p198_p10)  ;;  %p232_p11 = scmp.lt.s32.totalorder (!%p198_p10), %s560_s18, 1  ;;  %v570_v1 = vmov (!%p198_p10), 3   ;;  %v571_v2 = vmov (!%p198_p10), 2   ;;  %vm247_vm0 = vcmask (!%p198_p10), 246784   ;;  %v572_v3 = vmov (!%p198_p10), 0  }
   0xf   : > { %201 = sbr.rel (%p198_p10) target bundleno = 298 (0x12a), region = 36  ;;  %486 = vset.pattern.permute.xlu1 (!%p198_p10), %v570_v1  ;;  %485 = vset.pattern.permute.xlu0 (!%p198_p10), %v571_v2  ;;  %s573_s13 = smov (!%p198_p10), 31   ;;  %v256_v6 = vld [vmem:[%s726_s3] sm:$0xff] (!%p198_p10)  ;;  %v574_v7 = vmov (!%p198_p10), 1   ;;  %vm254_vm1 = vcmask (!%p198_p10), 255224   ;;  %vm307_vm2 = vcmask (!%p198_p10), 252928  }
  0x10   : > { %297 = vperm.xlu1 (!%p198_p10), %486, %v257_v0   ;;  %s575_s22 = smov (!%p198_p10), 127   ;;  %s229_s24 = sand.u32 (!%p198_p10), 1, %s552_s16  }
  0x11   : > { %s415_s26 = sshll.u32 (!%p198_p10), %s229_s24, 3  ;;  %s421_s29 = sshll.u32 (!%p198_p10), %s560_s18, 7 }
  0x12   : > { %s231_s30 = scalar_lea.vmem (!%p198_p10), [#allocation3], %s415_s26  ;;  %s676_s8 = scalar_lea.hbm (!%p198_p10), %s727_s4, %s421_s29 }
  0x14   : > { %487 = vset.pattern.permute.xlu1 (!%p198_p10), %v572_v3 }
  0x15   : > { %266 = vperm.xlu1 (!%p198_p10), %487, %v257_v0  }
  0x16   : > { %s233_s5 = scalar_select %p232_p11, %s560_s18, 1 }
  0x17   : > { %s576_s18 = smov [#allocation3]  }
  0x18   : > { %s416_s6 = sshll.u32 %s233_s5, 1  ;;  %s324_s5 = sshll.u32 %s231_s30, 4  ;;  %s678_s5 = int_to_ptr.vmem [resolvable:$true] %s324_s5 }
  0x19   : > { %s245_s9 = scalar_lea.vmem %s724_s1, %s416_s6  ;;  %s238_s12 = scalar_lea.vmem %s723_s0, %s416_s6  ;;  %260 = vperm.xlu1 %487, %v256_v6  }
  0x1a   : > { %v249_v4 = vld [vmem:[%s245_s9] sm:$0x3]  ;;  %s310_s9 = scalar_lea.sflag [#allocation4], %s229_s24  ;;  %s490_s10 = scalar_lea.vmem %s678_s5, 128 }
  0x1b   : > { %v246_v5 = vld [vmem:[%s238_s12] sm:$0x3]  ;;  %251 = vrot.lane.b32.xlu0 %v249_v4, %s573_s13  ;;  %p491_p12 = scmp.ne.s32.totalorder %s678_s5, %s490_s10  ;;  %s494_s11 = sshll.u32 %s576_s18, 4  ;;  %s495_s11 = int_to_ptr.vmem [resolvable:$false] %s494_s11 }
  0x1c   : > { %248 = vst.msk [vmem:[#allocation2] sm:$0x3] %vm247_vm0, %v246_v5  ;;  %s496_s12 = scalar_lea.vmem %s495_s11, 256  ;;  %p497_p1 = scmp.lt.s32.totalorder %s678_s5, %s495_s11 }
  0x1d   : > { %p492_p13 = pnand %p491_p12, %p642_p4  ;;  %p498_p2 = scmp.lt.s32.totalorder %s496_s12, %s490_s10 }
  0x1f   : > { %287 = vperm.xlu0 %485, %v257_v0   ;;  %p493_p0 = pneg %p492_p13  ;;  %p499_p3 = por %p498_p2, %p497_p1 }
  0x21   : > { %p500_p5 = pnand %p499_p3, %p493_p0 }
  0x23   : > { %488 = vset.pattern.permute.xlu0 %v574_v7 }
  0x24   : > { %277 = vperm.xlu0 %488, %v257_v0  }
  0x28   : > { %489 = vset.pattern.permute.xlu0 %v570_v1 }
  0x8d   : > { %v252_v8 = vpop.permute.xlu0 %251 }
  0x8e   : > { %255 = vst.msk [vmem:[#allocation2] sm:$0x3] %vm254_vm1, %v252_v8 }
  0x8f   : > { %v298_v9 = vpop.permute.xlu1 %297 }
  0x94   : > { %v267_v10 = vpop.permute.xlu1 %266 }
  0x95   : > { %v418_v11 = vld [vmem:[#allocation2] ss:$0 sm:$0xff]  ;;  %v419_v14 = vld [vmem:[#allocation2 + $0x1] ss:$0 sm:$0xff] }
  0x96   : > { %v273_v16 = vmul.f32 %v418_v11, %v267_v10  ;;  %v300_v17 = vmul.f32 %v419_v14, %v298_v9 }
  0x98   : > { %v261_v15 = vpop.permute.xlu1 %260 }
  0x99   : > { %v274_v19 = vadd.f32 %v273_v16, %v261_v15 }
  0x9e   : > { %v288_v12 = vpop.permute.xlu0 %287 }
  0x9f   : > { %v290_v13 = vmul.f32 %v418_v11, %v288_v12 }
  0xa1   : > { %292 = vrot.lane.b32.xlu1 %v290_v13, %s575_s22 }
  0xa3   : > { %v278_v18 = vpop.permute.xlu0 %277 }
  0xa4   : > { %v284_v20 = vmul.f32 %v419_v14, %v278_v18 }
  0xa5   : > { %302 = vrot.lane.b32.xlu1 %v300_v17, %s575_s22 }
  0xa6   : > { %v285_v21 = vadd.f32 %v284_v20, %v274_v19 }
 0x113   : > { %v293_v22 = vpop.permute.xlu1 %292 }
 0x114   : > { %v295_v23 = vadd.f32 %v293_v22, %v285_v21 }
 0x117   : > { %v303_v24 = vpop.permute.xlu1 %302 }
 0x118   : > { %v305_v25 = vadd.f32 %v303_v24, %v295_v23 }
 0x11a   : > { %v306_v26 = vmax.f32 %v305_v25, 0.0 }
 0x11c   : > { %308 = vst.msk [vmem:[%s231_s30] sm:$0xff] %vm307_vm2, %v306_v26 }
 0x11d   : > { %503 = shalt.err (!%p500_p5)
}
 0x11e   : > { %s504_s13 = scalar_lea.hbm %s676_s8, 128  ;;  %s508_s22 = scalar_lea.hbm %s727_s4, 256 }
 0x11f   : > { %p505_p6 = scmp.ne.s32.totalorder %s676_s8, %s504_s13  ;;  %p509_p10 = scmp.lt.u32.totalorder %s676_s8, %s727_s4 }
 0x120   : > { %p510_p11 = scmp.lt.u32.totalorder %s508_s22, %s504_s13  ;;  %p512_p13 = scmp.lt.u32.totalorder %s504_s13, %s676_s8 }
 0x121   : > { %p506_p7 = pnand %p505_p6, %p642_p4 }
 0x122   : > { %p511_p12 = por %p510_p11, %p509_p10 }
 0x123   : > { %p507_p9 = pneg %p506_p7 }
 0x124   : > { %p513_p0 = por %p512_p13, %p511_p12 }
 0x126   : > { %p514_p1 = pnand %p513_p0, %p507_p9 }
 0x128   : > { %517 = shalt.err (!%p514_p1)
}
 0x129   : > { %424 = dma.vmem_to_hbm [thread:$0]  (%p642_p4), %s678_s5, 128, %s676_s8, %s310_s9  }
 0x12a PF: > { %p430_p2 = scmp.ge.s32.totalorder %s568_s20, 2  ;;  %s336_s29 = sand.u32 1, %s548_s15  }
 0x12b   : > { %s337_s30 = scalar_lea.sflag [#allocation4], %s336_s29 }
 0x12c   : > { %p427_p3 = pnand %p430_p2, %p649_p8 }
 0x12e   : > { %543 = dma.done.wait (!%p427_p3), %s337_s30, 128  }
 0x12f   : > { %545 = vsyncadd (!%p427_p3), %s337_s30, 4294967168  ;;  %s17_s20 = sadd.s32 1, %s568_s20   ;;  %s730_s15 = smov %s552_s16 }
 0x130   : > { %p14_p5 = scmp.ge.s32.totalorder %s17_s20, 4   ;;  %s731_s16 = smov %s556_s17 }
 0x131   : > { %s732_s17 = smov %s655_s28  ;;  %s733_s18 = smov %s564_s19 }
 0x132   : > { %s734_s19 = smov %s736_s23  ;;  %16 = sbr.rel (!%p14_p5) target bundleno = 4 (0x4), region = 74 }
 0x139   :  { %342 = vsyncpa [#allocation4], 1 }
 0x13a   :  { %344 = vsyncpa [#allocation4 + $0x1], 1 }

</bundles_post_ra>
